<compile_context>
chip_gen: v6e
topology: v6e:2x2x1
jax: 0.10.0
libtpu: 0.0.40
codegen_flags: <defaults>
</compile_context>

<pallas_src>
import functools

import jax
import jax.numpy as jnp
from jax.experimental import pallas as pl
from jax.experimental.pallas import tpu as pltpu


# --------------------------------------------------------------------------- #
# Kernels
# --------------------------------------------------------------------------- #
def _fused_kernel_with_feat(x_ref, w1_ref, b1_ref, w2_ref, b2_ref,
                            logits_ref, feat_ref):
    # featurizer: Linear (bf16 MXU operands, f32 accumulate) + bias + ReLU.
    # X arrives as f32; cast on the VPU here (hidden under DMA/MXU) instead of
    # paying an extra wrapper-side HBM pass.
    x = x_ref[...].astype(jnp.bfloat16)
    acc1 = jnp.dot(x, w1_ref[...], preferred_element_type=jnp.float32)
    feat = jnp.maximum(acc1 + b1_ref[...], 0.0)          # f32 bias add on VPU
    feat_ref[...] = feat.astype(feat_ref.dtype)

    # classifier: Linear
    acc2 = jnp.dot(feat.astype(w2_ref.dtype), w2_ref[...],
                   preferred_element_type=jnp.float32)
    logits_ref[...] = (acc2 + b2_ref[...]).astype(logits_ref.dtype)


def _fused_kernel_no_feat(x_ref, w1_ref, b1_ref, w2_ref, b2_ref, logits_ref):
    # Same math, but features never leave VMEM/vregs (no HBM writeback).
    x = x_ref[...].astype(jnp.bfloat16)
    acc1 = jnp.dot(x, w1_ref[...], preferred_element_type=jnp.float32)
    feat = jnp.maximum(acc1 + b1_ref[...], 0.0)
    acc2 = jnp.dot(feat.astype(w2_ref.dtype), w2_ref[...],
                   preferred_element_type=jnp.float32)
    logits_ref[...] = (acc2 + b2_ref[...]).astype(logits_ref.dtype)


# --------------------------------------------------------------------------- #
# Helpers
# --------------------------------------------------------------------------- #
def _round_up(n, m):
    return ((n + m - 1) // m) * m


def _pad2d(a, rows, cols):
    pr, pc = rows - a.shape[0], cols - a.shape[1]
    if pr == 0 and pc == 0:
        return a
    return jnp.pad(a, ((0, pr), (0, pc)))


@functools.lru_cache(maxsize=1)
def _tpu_info():
    """(vmem_capacity_bytes, is_v7x, is_v5_or_older) -- best-effort, cached."""
    kind = ""
    try:
        kind = jax.devices()[0].device_kind.lower()
    except Exception:
        pass
    is_v7 = "v7" in kind
    is_old = any(t in kind for t in ("v2", "v3", "v4", "v5"))
    vmem_cap = 0
    try:
        vmem_cap = int(pltpu.get_tpu_info().vmem_capacity_bytes)
    except Exception:
        vmem_cap = 0
    if vmem_cap <= 0:
        if is_v7:
            vmem_cap = 64 * 1024 * 1024
        elif "v2" in kind or "v3" in kind:
            vmem_cap = 16 * 1024 * 1024
        else:
            vmem_cap = 128 * 1024 * 1024
    return vmem_cap, is_v7, is_old


def _pad_hidden_dim(h, mxu_256):
    h_pad = _round_up(h, 128)
    # v6e/v7x MXUs are 2x256x256: avoid odd multiples of 128 for wider H so the
    # dominant first matmul fills the full MXU width (keep 128-rounding on v5e-).
    if mxu_256 and h > 128 and h_pad % 256 == 128:
        h_pad = _round_up(h, 256)
    return h_pad


def prepare_classifier_params(w1, b1, w2, b2):
    """Pad + bf16-cast the weights ONCE (hoisted out of the per-call forward).

    Weights are constant across forwards; doing the lane-dense 128 padding and
    the f32->bf16 cast here avoids re-reading/re-writing the full weight
    matrices in HBM on every call.
    Returns ((w1_p, b1_p, w2_p, b2_p), (hidden, n_classes)).
    """
    D, H = w1.shape
    C = w2.shape[1]
    _, _, is_old = _tpu_info()
    H_pad = _pad_hidden_dim(H, mxu_256=not is_old)
    C_pad = _round_up(C, 128)
    w1_p = _pad2d(jnp.asarray(w1), D, H_pad).astype(jnp.bfloat16)
    w2_p = _pad2d(jnp.asarray(w2), H_pad, C_pad).astype(jnp.bfloat16)
    b1_p = _pad2d(jnp.asarray(b1).reshape(1, H).astype(jnp.float32), 1, H_pad)
    b2_p = _pad2d(jnp.asarray(b2).reshape(1, C).astype(jnp.float32), 1, C_pad)
    return (w1_p, b1_p, w2_p, b2_p), (H, C)


# --------------------------------------------------------------------------- #
# Forward wrapper
# --------------------------------------------------------------------------- #
def classifier_forward(x, w1_p, b1_p, w2_p, b2_p, *, hidden, n_classes,
                       return_feat=False, feat_dtype=jnp.bfloat16,
                       batch_tile=None):
    """Pallas-fused forward: classifier(featurizer(x)).

    x                      : (B, D) float32 (cast to bf16 inside the kernel)
    w1_p (D, H_pad) bf16, b1_p (1, H_pad) f32   -- from prepare_classifier_params
    w2_p (H_pad, C_pad) bf16, b2_p (1, C_pad) f32
    """
    B, D = x.shape
    H_pad = w1_p.shape[1]
    C_pad = w2_p.shape[1]
    H, C = hidden, n_classes
    out_dtype = x.dtype

    vmem_cap, is_v7, _ = _tpu_info()

    # ---- batch tile selection (generation- and batch-aware) -----------------
    if batch_tile is None:
        # v5e/v6e: 512-row tiles (~85% of HBM roofline vs ~63% at 256); 128 MiB
        # VMEM easily holds the resident weights + double-buffered tiles.
        # v7x: 256 (64 MiB VMEM once resident weights are counted).
        batch_tile = 256 if is_v7 else 512
    TB = min(batch_tile, _round_up(max(B, 1), 8))
    if is_v7 and B >= 16 and pl.cdiv(B, TB) < 2:
        # v7x has 2 TensorCores: give the "parallel" batch axis >= 2 steps so
        # the second core does not idle.
        TB = max(8, _round_up(-(-B // 2), 8))
    grid = (pl.cdiv(B, TB),)   # ragged last tile handled by masked boundary DMA

    # X / feat / logits stream along the batch grid; weights & biases use a
    # constant block index (VMEM-resident) and are single-buffered.
    resident = dict(pipeline_mode=pl.Buffered(1))
    in_specs = [
        pl.BlockSpec((TB, D), lambda i: (i, 0)),
        pl.BlockSpec((D, H_pad), lambda i: (0, 0), **resident),
        pl.BlockSpec((1, H_pad), lambda i: (0, 0), **resident),
        pl.BlockSpec((H_pad, C_pad), lambda i: (0, 0), **resident),
        pl.BlockSpec((1, C_pad), lambda i: (0, 0), **resident),
    ]
    logits_spec = pl.BlockSpec((TB, C_pad), lambda i: (i, 0))
    feat_spec = pl.BlockSpec((TB, H_pad), lambda i: (i, 0))

    # ---- VMEM budget (path-aware, generation-aware) --------------------------
    x_bytes = jnp.dtype(x.dtype).itemsize
    weight_bytes = (D * H_pad + H_pad * C_pad) * 2 + (H_pad + C_pad) * 4  # 1 copy
    tile_bytes = 2 * TB * D * x_bytes                       # double-buffered X
    tile_bytes += 2 * TB * C_pad * jnp.dtype(out_dtype).itemsize
    if return_feat:
        tile_bytes += 2 * TB * H_pad * jnp.dtype(feat_dtype).itemsize
    need = weight_bytes + tile_bytes
    # Leave headroom for compiler-internal scratch: ~85% of physical on v7x,
    # up to ~100 MiB on v5e/v6e (128 MiB physical).
    cap = min(int(vmem_cap * (0.85 if is_v7 else 0.80)), 100 * 1024 * 1024)
    vmem_limit = int(min(max(2 * need, 32 * 1024 * 1024), cap))
    compiler_params = pltpu.CompilerParams(
        dimension_semantics=("parallel",),   # megacore-shardable batch axis
        vmem_limit_bytes=vmem_limit,
    )

    if return_feat:
        logits_p, feat_p = pl.pallas_call(
            _fused_kernel_with_feat,
            grid=grid,
            in_specs=in_specs,
            out_specs=(logits_spec, feat_spec),
            out_shape=(
                jax.ShapeDtypeStruct((B, C_pad), out_dtype),
                jax.ShapeDtypeStruct((B, H_pad), feat_dtype),
            ),
            compiler_params=compiler_params,
        )(x, w1_p, b1_p, w2_p, b2_p)
        return logits_p[:, :C], feat_p[:, :H]

    logits_p = pl.pallas_call(
        _fused_kernel_no_feat,
        grid=grid,
        in_specs=in_specs,
        out_specs=logits_spec,
        out_shape=jax.ShapeDtypeStruct((B, C_pad), out_dtype),
        compiler_params=compiler_params,
    )(x, w1_p, b1_p, w2_p, b2_p)
    return logits_p[:, :C]


# --------------------------------------------------------------------------- #
# Demo / correctness check
# --------------------------------------------------------------------------- #
def _init_params(key, d_in, hidden, n_classes):
    """Deterministic parameter init (Lecun-ish uniform, matches nn.Linear shapes)."""
    k1, k2, k3, k4 = jax.random.split(key, 4)
    lim1 = 1.0 / jnp.sqrt(d_in)
    lim2 = 1.0 / jnp.sqrt(hidden)
    w1 = jax.random.uniform(k1, (d_in, hidden), jnp.float32, -lim1, lim1)
    b1 = jax.random.uniform(k2, (1, hidden), jnp.float32, -lim1, lim1)
    w2 = jax.random.uniform(k3, (hidden, n_classes), jnp.float32, -lim2, lim2)
    b2 = jax.random.uniform(k4, (1, n_classes), jnp.float32, -lim2, lim2)
    return w1, b1, w2, b2


if __name__ == "__main__":
    key = jax.random.PRNGKey(0)
    kx, kp = jax.random.split(key)

    B, D_IN, HIDDEN, N_CLASSES = 8, 32, 64, 8
    x = jax.random.normal(kx, (B, D_IN), jnp.float32)
    w1, b1, w2, b2 = _init_params(kp, D_IN, HIDDEN, N_CLASSES)

    # Pad + cast the weights ONCE (hoisted out of the per-call forward).
    (w1_p, b1_p, w2_p, b2_p), (H, C) = prepare_classifier_params(w1, b1, w2, b2)

    fwd_with_feat = jax.jit(functools.partial(
        classifier_forward, hidden=H, n_classes=C, return_feat=True))
    fwd = jax.jit(functools.partial(
        classifier_forward, hidden=H, n_classes=C, return_feat=False))

    # forward(X, return_feat=True) -> (logits, feat)
    logits, feat = fwd_with_feat(x, w1_p, b1_p, w2_p, b2_p)
    jax.block_until_ready((logits, feat))

    # Default forward(X) path (no feature writeback to HBM).
    logits_only = fwd(x, w1_p, b1_p, w2_p, b2_p)
    jax.block_until_ready(logits_only)

    # Reference in plain JAX, replicating the kernel's numerics
    # (bf16 MXU operands, f32 accumulation, f32 bias/ReLU).
    xb = x.astype(jnp.bfloat16)
    w1b = w1.astype(jnp.bfloat16)
    w2b = w2.astype(jnp.bfloat16)
    feat_ref = jnp.maximum(
        jnp.dot(xb, w1b, preferred_element_type=jnp.float32) + b1, 0.0)
    logits_ref = jnp.dot(feat_ref.astype(jnp.bfloat16), w2b,
                         preferred_element_type=jnp.float32) + b2

    assert logits.shape == (B, N_CLASSES) and feat.shape == (B, HIDDEN)
    assert logits.dtype == x.dtype and feat.dtype == jnp.bfloat16
    # feat is written back as bf16 -> compare with bf16-level tolerance.
    assert jnp.allclose(feat.astype(jnp.float32), feat_ref, atol=2e-2, rtol=2e-2)
    assert jnp.allclose(logits, logits_ref, atol=1e-3, rtol=1e-3)
    assert jnp.allclose(logits_only, logits, atol=1e-5, rtol=1e-5)

    print("KERNEL_OK")
</pallas_src>

<mosaic_0001>
module attributes {stable_mosaic.version = 11 : i64} {
  func.func @_fused_kernel_with_feat(%arg0: i32, %arg1: memref<8x32xf32, #tpu.memory_space<vmem>>, %arg2: memref<32x128xbf16, #tpu.memory_space<vmem>>, %arg3: memref<1x128xf32, #tpu.memory_space<vmem>>, %arg4: memref<128x128xbf16, #tpu.memory_space<vmem>>, %arg5: memref<1x128xf32, #tpu.memory_space<vmem>>, %arg6: memref<8x128xf32, #tpu.memory_space<vmem>>, %arg7: memref<8x128xbf16, #tpu.memory_space<vmem>>) attributes {dimension_semantics = [#tpu.dimension_semantics<parallel>], iteration_bounds = array<i64: 1>, scalar_prefetch = 0 : i64, scratch_operands = 0 : i64, tpu.core_type = #tpu.core_type<tc>, window_params = [{transform_indices = @transform_0, window_bounds = array<i64: 8, 32>}, {pipeline_mode = #tpu.pipeline_mode<synchronous>, transform_indices = @transform_1, window_bounds = array<i64: 32, 128>}, {pipeline_mode = #tpu.pipeline_mode<synchronous>, transform_indices = @transform_2, window_bounds = array<i64: 1, 128>}, {pipeline_mode = #tpu.pipeline_mode<synchronous>, transform_indices = @transform_3, window_bounds = array<i64: 128, 128>}, {pipeline_mode = #tpu.pipeline_mode<synchronous>, transform_indices = @transform_4, window_bounds = array<i64: 1, 128>}, {transform_indices = @transform_5, window_bounds = array<i64: 8, 128>}, {transform_indices = @transform_6, window_bounds = array<i64: 8, 128>}]} {
    %c0 = arith.constant 0 : index
    %c0_0 = arith.constant 0 : index
    %0 = vector.load %arg1[%c0, %c0_0] : memref<8x32xf32, #tpu.memory_space<vmem>>, vector<8x32xf32>
    %1 = arith.truncf %0 : vector<8x32xf32> to vector<8x32xbf16>
    %c0_1 = arith.constant 0 : index
    %c0_2 = arith.constant 0 : index
    %2 = vector.load %arg2[%c0_1, %c0_2] : memref<32x128xbf16, #tpu.memory_space<vmem>>, vector<32x128xbf16>
    %cst = arith.constant dense<0.000000e+00> : vector<8x128xf32>
    %3 = tpu.matmul %1, %2, %cst {dimension_numbers = #tpu.dot_dimension_numbers<[1], [0], [0], [1], [0, 0, 1, 1], [], []>} : vector<8x32xbf16>, vector<32x128xbf16>, vector<8x128xf32> -> vector<8x128xf32>
    %c0_3 = arith.constant 0 : index
    %c0_4 = arith.constant 0 : index
    %4 = vector.load %arg3[%c0_3, %c0_4] : memref<1x128xf32, #tpu.memory_space<vmem>>, vector<1x128xf32>
    %5 = vector.broadcast %4 : vector<1x128xf32> to vector<8x128xf32>
    %6 = arith.addf %3, %5 : vector<8x128xf32>
    %cst_5 = arith.constant 0.000000e+00 : f32
    %7 = vector.broadcast %cst_5 : f32 to vector<8x128xf32>
    %8 = arith.maximumf %6, %7 : vector<8x128xf32>
    %9 = arith.truncf %8 : vector<8x128xf32> to vector<8x128xbf16>
    %c0_6 = arith.constant 0 : index
    %c0_7 = arith.constant 0 : index
    %10 = vector.load %arg7[%c0_6, %c0_7] : memref<8x128xbf16, #tpu.memory_space<vmem>>, vector<8x128xbf16>
    tpu.vector_store %arg7[%c0_6, %c0_7], %9 {strides = array<i32>} : memref<8x128xbf16, #tpu.memory_space<vmem>>, vector<8x128xbf16>,
    %11 = arith.truncf %8 : vector<8x128xf32> to vector<8x128xbf16>
    %c0_8 = arith.constant 0 : index
    %c0_9 = arith.constant 0 : index
    %12 = vector.load %arg4[%c0_8, %c0_9] : memref<128x128xbf16, #tpu.memory_space<vmem>>, vector<128x128xbf16>
    %cst_10 = arith.constant dense<0.000000e+00> : vector<8x128xf32>
    %13 = tpu.matmul %11, %12, %cst_10 {dimension_numbers = #tpu.dot_dimension_numbers<[1], [0], [0], [1], [0, 0, 1, 1], [], []>} : vector<8x128xbf16>, vector<128x128xbf16>, vector<8x128xf32> -> vector<8x128xf32>
    %c0_11 = arith.constant 0 : index
    %c0_12 = arith.constant 0 : index
    %14 = vector.load %arg5[%c0_11, %c0_12] : memref<1x128xf32, #tpu.memory_space<vmem>>, vector<1x128xf32>
    %15 = vector.broadcast %14 : vector<1x128xf32> to vector<8x128xf32>
    %16 = arith.addf %13, %15 : vector<8x128xf32>
    %c0_13 = arith.constant 0 : index
    %c0_14 = arith.constant 0 : index
    %17 = vector.load %arg6[%c0_13, %c0_14] : memref<8x128xf32, #tpu.memory_space<vmem>>, vector<8x128xf32>
    tpu.vector_store %arg6[%c0_13, %c0_14], %16 {strides = array<i32>} : memref<8x128xf32, #tpu.memory_space<vmem>>, vector<8x128xf32>,
    return
  }
  func.func @transform_0(%arg0: i32) -> (i32, i32) {
    %c0_i32 = arith.constant 0 : i32
    %c0_i32_0 = arith.constant 0 : i32
    return %arg0, %c0_i32 : i32, i32
  }
  func.func @transform_1(%arg0: i32) -> (i32, i32) {
    %c0_i32 = arith.constant 0 : i32
    %c0_i32_0 = arith.constant 0 : i32
    %c0_i32_1 = arith.constant 0 : i32
    return %c0_i32, %c0_i32_0 : i32, i32
  }
  func.func @transform_2(%arg0: i32) -> (i32, i32) {
    %c0_i32 = arith.constant 0 : i32
    %c0_i32_0 = arith.constant 0 : i32
    %c0_i32_1 = arith.constant 0 : i32
    return %c0_i32, %c0_i32_0 : i32, i32
  }
  func.func @transform_3(%arg0: i32) -> (i32, i32) {
    %c0_i32 = arith.constant 0 : i32
    %c0_i32_0 = arith.constant 0 : i32
    %c0_i32_1 = arith.constant 0 : i32
    return %c0_i32, %c0_i32_0 : i32, i32
  }
  func.func @transform_4(%arg0: i32) -> (i32, i32) {
    %c0_i32 = arith.constant 0 : i32
    %c0_i32_0 = arith.constant 0 : i32
    %c0_i32_1 = arith.constant 0 : i32
    return %c0_i32, %c0_i32_0 : i32, i32
  }
  func.func @transform_5(%arg0: i32) -> (i32, i32) {
    %c0_i32 = arith.constant 0 : i32
    %c0_i32_0 = arith.constant 0 : i32
    return %arg0, %c0_i32 : i32, i32
  }
  func.func @transform_6(%arg0: i32) -> (i32, i32) {
    %c0_i32 = arith.constant 0 : i32
    %c0_i32_0 = arith.constant 0 : i32
    return %arg0, %c0_i32 : i32, i32
  }
}

</mosaic_0001>

<bundles_post_ra>
// kernel: classifier_forward.1
= control target key start
LH: loop header
LB: loop body
LE: loop exit
PB: predicated region body
PF: predicated region fallthrough
CT: control target
= control target key end

     0   :  { %12 = vsyncpa [#allocation3], 0  ;;  %s523_s0 = inlined_call_operand.hbm [shape: f32[8,32], index: 0, kind: input, shape index: {}]   ;;  %s524_s1 = inlined_call_operand.hbm [shape: bf16[32,128], index: 1, kind: input, shape index: {}]   ;;  %s525_s2 = inlined_call_operand.vmem [shape: f32[1,128], index: 2, kind: input, shape index: {}]   ;;  %s526_s3 = inlined_call_operand.hbm [shape: bf16[128,128], index: 3, kind: input, shape index: {}]   ;;  %s527_s4 = inlined_call_operand.vmem [shape: f32[1,128], index: 4, kind: input, shape index: {}]   ;;  %s528_s5 = inlined_call_operand.hbm [shape: f32[8,128], index: 5, kind: output, shape index: {0}]   ;;  %s529_s6 = inlined_call_operand.hbm [shape: bf16[8,128], index: 6, kind: output, shape index: {1}]  }
   0x1   :  { %13 = vsyncpa [#allocation6], 0 }
   0x2   :  { %14 = vsyncpa [#allocation4], 0 }
   0x3   :  { %15 = vsyncpa [#allocation10], 0  ;;  %s458_s21 = smov [#allocation5]  }
   0x4   :  { %s31_s22 = sshll.u32 %s458_s21, 4  ;;  %s32_s22 = int_to_ptr.vmem [resolvable:$true] %s31_s22 }
   0x5   :  { %s358_s23 = scalar_lea.vmem %s32_s22, 256  ;;  %p363_p1 = scmp.lt.s32.totalorder %s32_s22, %s32_s22 }
   0x6   :  { %p359_p0 = scmp.ne.s32.totalorder %s32_s22, %s358_s23  ;;  %p364_p2 = scmp.lt.s32.totalorder %s358_s23, %s358_s23 }
   0x8   :  { %p365_p3 = por %p364_p2, %p363_p1 }
   0xa   :  { %p366_p4 = pnand %p365_p3, %p359_p0 }
   0xc   :  { %369 = shalt.err (!%p366_p4)
}
   0xd   :  { %s459_s24 = smov 64   ;;  %s460_s25 = smov 4  }
   0xe   :  { %37 = dma.hbm_to_vmem [thread:$0]  %s524_s1, 256, %s32_s22, [#allocation6], %s459_s24, %s459_s24, %s460_s25  }
   0xf   :  { %s461_s28 = smov [#allocation2]   ;;  %s462_s30 = smov [#allocation7]  }
  0x10   :  { %s22_s29 = sshll.u32 %s461_s28, 4  ;;  %s45_s7 = sshll.u32 %s462_s30, 4  ;;  %s23_s29 = int_to_ptr.vmem [resolvable:$true] %s22_s29  ;;  %s46_s7 = int_to_ptr.vmem [resolvable:$true] %s45_s7 }
  0x11   :  { %s378_s8 = scalar_lea.vmem %s23_s29, 128  ;;  %p383_p6 = scmp.lt.s32.totalorder %s23_s29, %s23_s29 }
  0x12   :  { %p379_p5 = scmp.ne.s32.totalorder %s23_s29, %s378_s8  ;;  %p384_p7 = scmp.lt.s32.totalorder %s378_s8, %s378_s8 }
  0x14   :  { %p385_p8 = por %p384_p7, %p383_p6 }
  0x16   :  { %p386_p9 = pnand %p385_p8, %p379_p5 }
  0x18   :  { %389 = shalt.err (!%p386_p9)
}
  0x19   :  { %25 = dma.hbm_to_vmem [thread:$0]  %s523_s0, 128, %s23_s29, [#allocation3]  }
  0x1a   :  { %s398_s11 = scalar_lea.vmem %s46_s7, 1024  ;;  %p403_p11 = scmp.lt.s32.totalorder %s46_s7, %s46_s7 }
  0x1b   :  { %p399_p10 = scmp.ne.s32.totalorder %s46_s7, %s398_s11  ;;  %p404_p12 = scmp.lt.s32.totalorder %s398_s11, %s398_s11 }
  0x1d   :  { %p405_p13 = por %p404_p12, %p403_p11 }
  0x1f   :  { %p406_p0 = pnand %p405_p13, %p399_p10 }
  0x21   :  { %409 = shalt.err (!%p406_p0)
}
  0x22   :  { %51 = dma.hbm_to_vmem [thread:$0]  %s526_s3, 1024, %s46_s7, [#allocation6], %s459_s24, %s459_s24, %s460_s25  }
  0x23   :  { %450 = dma.done.wait [#allocation3], 128  }
  0x24   :  { %451 = vsyncadd [#allocation3], 4294967168 }
  0x25   :  { %452 = dma.done.wait [#allocation6], 1280  }
  0x26   :  { %453 = vsyncadd [#allocation6], 4294966016  ;;  %v463_v0 = vmov 0.0   ;;  %vm464_vm0 = vmmov 0   ;;  %v340_v1 = vld [vmem:[#allocation5 + $0x8] sm:$0xff]   ;;  %v341_v2 = vld [vmem:[#allocation5] sm:$0xff]  }
  0x27   :  { %303 = vmatprep.subr.bf16.mxu0 %v463_v0  ;;  %307 = vmatprep.mubr.msk.bf16.mxu0 %vm464_vm0, %v463_v0  ;;  %v64_v3 = vld [vmem:[#allocation2] sm:$0xff]  ;;  %v342_v4 = vld [vmem:[#allocation7 + $0x38] sm:$0xff]   ;;  %v343_v6 = vld [vmem:[#allocation7 + $0x30] sm:$0xff]   ;;  %vm89_vm1 = vcmask 261120   ;;  %s465_s13 = smov [#allocation9]  }
  0x28   :  { %311 = vmatprep.subr.bf16.mxu1 %v463_v0  ;;  %327 = vmatprep.mubr.msk.bf16.mxu1 %vm464_vm0, %v463_v0  ;;  %v65_v5 = vpack.c.bf16 %v64_v3, %v64_v3  ;;  %v344_v7 = vld [vmem:[#allocation7 + $0x28] sm:$0xff]   ;;  %v345_v8 = vld [vmem:[#allocation7 + $0x20] sm:$0xff]   ;;  %v346_v9 = vld [vmem:[#allocation7 + $0x18] sm:$0xff]   ;;  %s264_s14 = sshll.u32 %s465_s13, 4  ;;  %s265_s14 = int_to_ptr.vmem [resolvable:$true] %s264_s14 }
  0x29   :  { %304 = vmatpush3.bf16.msra.mxu0 %v340_v1  ;;  %312 = vmatpush3.bf16.msra.mxu1 %v342_v4  ;;  %v347_v10 = vld [vmem:[#allocation7 + $0x10] sm:$0xff]   ;;  %v348_v11 = vld [vmem:[#allocation7 + $0x8] sm:$0xff]   ;;  %v349_v12 = vld [vmem:[#allocation7] sm:$0xff]   ;;  %s410_s15 = scalar_lea.vmem %s265_s14, 64  ;;  %p415_p2 = scmp.lt.s32.totalorder %s265_s14, %s265_s14 }
  0x2a   :  { %305 = vmatprep.subr.bf16.mxu0 %v463_v0  ;;  %313 = vmatprep.subr.bf16.mxu1 %v463_v0  ;;  %v278_v13 = vld [vmem:[%s525_s2] ss:$0 sm:$0xff]  ;;  %p411_p1 = scmp.ne.s32.totalorder %s265_s14, %s410_s15  ;;  %p416_p3 = scmp.lt.s32.totalorder %s410_s15, %s410_s15 }
  0x2c   :  { %p417_p4 = por %p416_p3, %p415_p2 }
  0x2d   :  { %306 = vmatpush3.bf16.msra.mxu0 %v341_v2  ;;  %314 = vmatpush3.bf16.msra.mxu1 %v343_v6 }
  0x2e   :  { %315 = vmatprep.subr.bf16.mxu1 %v463_v0  ;;  %p418_p5 = pnand %p417_p4, %p411_p1 }
  0x30   :  { %308 = vmatmul.mubr.msk.bf16.vlgmr.msra.gmra.mxu0 %vm89_vm1, %v65_v5 }
  0x31   :  { %316 = vmatpush3.bf16.msra.mxu1 %v344_v7 }
  0x32   :  { %317 = vmatprep.subr.bf16.mxu1 %v463_v0 }
  0x35   :  { %318 = vmatpush3.bf16.msra.mxu1 %v345_v8 }
  0x36   :  { %319 = vmatprep.subr.bf16.mxu1 %v463_v0 }
  0x39   :  { %320 = vmatpush3.bf16.msra.mxu1 %v346_v9 }
  0x3a   :  { %321 = vmatprep.subr.bf16.mxu1 %v463_v0 }
  0x3d   :  { %322 = vmatpush3.bf16.msra.mxu1 %v347_v10 }
  0x3e   :  { %323 = vmatprep.subr.bf16.mxu1 %v463_v0 }
  0x41   :  { %324 = vmatpush3.bf16.msra.mxu1 %v348_v11 }
  0x42   :  { %325 = vmatprep.subr.bf16.mxu1 %v463_v0 }
  0x45   :  { %326 = vmatpush3.bf16.msra.mxu1 %v349_v12 }
  0xf0   :  { %v127_v14 = vpop.f32.mrf.mxu0 }
  0xf1   :  { %v128_v15 = vadd.f32 %v278_v13, %v127_v14 }
  0xf2   :  { %v309_v16 = vpop.f32.mrf.mxu0 }
  0xf3   :  { %v133_v17 = vmax.f32 %v128_v15, 0.0 }
  0xf4   :  { %v130_v18 = vpop.f32.mrf.mxu0 }
  0xf5   :  { %v134_v19 = vpack.c.bf16 %v133_v17, %v133_v17 }
  0xf6   :  { %v310_v20 = vpop.f32.mrf.mxu0 }
  0xf7   :  { %135 = vst [vmem:[#allocation9] sm:$0xf] %v134_v19  ;;  %328 = vmatmul.mubr.bf16.vlgmr.msra.gmra.mxu1 %v134_v19 }
  0xf8   :  { %421 = shalt.err (!%p418_p5)
}
  0xf9   :  { %267 = dma.vmem_to_hbm [thread:$0]  %s265_s14, 64, %s529_s6, [#allocation10]   ;;  %v282_v21 = vld [vmem:[%s527_s4] ss:$0 sm:$0xff] }
  0xfa   :  { %s466_s19 = smov [#allocation8]  }
  0xfb   :  { %s254_s20 = sshll.u32 %s466_s19, 4  ;;  %s255_s20 = int_to_ptr.vmem [resolvable:$true] %s254_s20 }
  0xfc   :  { %s430_s21 = scalar_lea.vmem %s255_s20, 128  ;;  %p435_p7 = scmp.lt.s32.totalorder %s255_s20, %s255_s20 }
  0xfd   :  { %p431_p6 = scmp.ne.s32.totalorder %s255_s20, %s430_s21  ;;  %p436_p8 = scmp.lt.s32.totalorder %s430_s21, %s430_s21 }
  0xff   :  { %p437_p9 = por %p436_p8, %p435_p7 }
 0x101   :  { %p438_p10 = pnand %p437_p9, %p431_p6 }
 0x1b7   :  { %v241_v22 = vpop.f32.mrf.mxu1 }
 0x1b8   :  { %v242_v23 = vadd.f32 %v282_v21, %v241_v22 }
 0x1b9   :  { %v329_v24 = vpop.f32.mrf.mxu1 }
 0x1ba   :  { %247 = vst [vmem:[#allocation8] sm:$0xff] %v242_v23 }
 0x1bb   :  { %v244_v25 = vpop.f32.mrf.mxu1 }
 0x1bc   :  { %441 = shalt.err (!%p438_p10)
}
 0x1bd   :  { %257 = dma.vmem_to_hbm [thread:$0]  %s255_s20, 128, %s528_s5, [#allocation4]   ;;  %v330_v26 = vpop.f32.mrf.mxu1 }
 0x1be   :  { %454 = dma.done.wait [#allocation4], 128  }
 0x1bf   :  { %455 = vsyncadd [#allocation4], 4294967168 }
 0x1c0   :  { %456 = dma.done.wait [#allocation10], 64  }
 0x1c1   :  { %457 = vsyncadd [#allocation10], 4294967232 }
 0x1c2   :  { %274 = vsyncpa [#allocation3], 1 }
 0x1c3   :  { %275 = vsyncpa [#allocation6], 1 }
 0x1c4   :  { %276 = vsyncpa [#allocation4], 1 }
 0x1c5   :  { %277 = vsyncpa [#allocation10], 1 }

</bundles_post_ra>
